<compile_context>
chip_gen: v6e
topology: v6e:2x2x1
jax: 0.10.0
libtpu: 0.0.40
codegen_flags: <defaults>
</compile_context>

<pallas_src>
from typing import Dict, Tuple

import jax
import jax.numpy as jnp
from jax.experimental import pallas as pl
from jax.experimental.pallas import tpu as pltpu
import numpy as np

VOID_CLASSES = [0, 1, 2, 3, 4, 5, 6, 9, 10, 14, 15, 16, 18, 29, 30, -1]
VALID_CLASSES = [7, 8, 11, 12, 13, 17, 19, 20, 21, 22, 23, 24, 25, 26, 27, 28,
                 31, 32, 33]
IGNORE_INDEX = len(VALID_CLASSES)  # 19

LANE = 1024          # last block dim: large multiple of 128 -> unmasked stores
MAX_TILE_ROWS = 512  # 512 * 1024 * 4 B = 2 MiB per block


def generate_class_map() -> Dict[int, int]:
    class_map: Dict[int, int] = {}
    for void_class in VOID_CLASSES:
        class_map[void_class] = IGNORE_INDEX
    for index, valid_class in enumerate(VALID_CLASSES):
        class_map[valid_class] = index
    return class_map


CLASS_MAP = generate_class_map()


def _encode_kernel(x_ref, o_ref):
    x = x_ref[...]

    def in_range(lo, hi):
        return jnp.logical_and(x >= lo, x <= hi)

    # Void ids: {-1..6, 9..10, 14..16, 18, 29..30} -> IGNORE_INDEX.
    void_mask = ((in_range(-1, 6) | in_range(9, 10))
                 | (in_range(14, 16) | (x == 18))
                 | in_range(29, 30))

    # Valid ids: 5 contiguous ranges, index = x - offset.
    m1 = in_range(7, 8)      # ids 7..8   -> 0..1   (x - 7)
    m2 = in_range(11, 13)    # ids 11..13 -> 2..4   (x - 9)
    m3 = x == 17             # id  17     -> 5      (x - 12)
    m4 = in_range(19, 28)    # ids 19..28 -> 6..15  (x - 13)
    m5 = in_range(31, 33)    # ids 31..33 -> 16..18 (x - 15)
    valid_mask = (m1 | m2) | (m3 | m4) | m5

    offset = jnp.where(m1, 7,
             jnp.where(m2, 9,
             jnp.where(m3, 12,
             jnp.where(m4, 13, 15)))).astype(x.dtype)

    out = jnp.where(valid_mask, x - offset, x)
    out = jnp.where(void_mask, jnp.asarray(IGNORE_INDEX, x.dtype), out)
    o_ref[...] = out


def encode_segmentation_map(seg_map: jax.Array) -> jax.Array:
    """Elementwise class-id remap of an integer label map of any shape."""
    orig_shape = seg_map.shape
    flat = seg_map.reshape(-1)
    n = flat.shape[0]

    # Lane-dense 2D slab: last dim = LANE (multiple of 128). Pick a row tile
    # of up to MAX_TILE_ROWS; pad the element count (once, in the wrapper) so
    # the grid divides evenly, and crop after the call.
    rows_needed = pl.cdiv(n, LANE)
    if rows_needed >= MAX_TILE_ROWS:
        tile_rows = MAX_TILE_ROWS
    else:
        tile_rows = max(8, pl.cdiv(rows_needed, 8) * 8)
    rows = pl.cdiv(rows_needed, tile_rows) * tile_rows

    n_pad = rows * LANE
    if n_pad != n:
        flat = jnp.pad(flat, (0, n_pad - n))
    x2d = flat.reshape(rows, LANE)

    out2d = pl.pallas_call(
        _encode_kernel,
        out_shape=jax.ShapeDtypeStruct((rows, LANE), seg_map.dtype),
        grid_spec=pl.GridSpec(
            grid=(rows // tile_rows,),
            in_specs=[pl.BlockSpec((tile_rows, LANE), lambda i: (i, 0))],
            out_specs=pl.BlockSpec((tile_rows, LANE), lambda i: (i, 0)),
        ),
        compiler_params=pltpu.CompilerParams(
            dimension_semantics=("parallel",)),
    )(x2d)

    return out2d.reshape(-1)[:n].reshape(orig_shape)


def encode_segmentation_tree(tree) -> Tuple[jax.Array, ...]:
    """Equivalent of EncodeSegmentationTree.forward: map the encoder over a
    pytree of segmentation maps."""
    return jax.tree_util.tree_map(encode_segmentation_map, tree)


def _reference_encode(seg_map: np.ndarray) -> np.ndarray:
    # Pure-numpy version of the PyTorch masked_fill chain (masks built from
    # the original map, so it is an order-independent lookup).
    out = seg_map.copy()
    for class_id, index in CLASS_MAP.items():
        out[seg_map == class_id] = index
    return out


if __name__ == "__main__":
    key = jax.random.PRNGKey(0)
    k0, k1, k2 = jax.random.split(key, 3)

    # Small label maps; values in [-3, 40) exercise every branch of the class
    # map (void, valid, passthrough below/above the Cityscapes id range).
    seg_a = jax.random.randint(k0, (2, 16, 16), minval=-3, maxval=40,
                               dtype=jnp.int32)
    seg_b = jax.random.randint(k1, (2, 16, 16), minval=-3, maxval=40,
                               dtype=jnp.int32)
    # Odd spatial size exercises the pad-and-crop (non-lane-aligned) path.
    seg_c = jax.random.randint(k2, (1, 17, 23), minval=-3, maxval=40,
                               dtype=jnp.int32)
    tree = (seg_a, (seg_b, seg_c))

    encoded = encode_segmentation_tree(tree)
    encoded = jax.block_until_ready(encoded)

    for inp, out in zip(jax.tree_util.tree_leaves(tree),
                        jax.tree_util.tree_leaves(encoded)):
        ref = _reference_encode(np.asarray(inp))
        np.testing.assert_array_equal(np.asarray(out), ref)
        assert out.dtype == inp.dtype
        assert out.shape == inp.shape

    print("KERNEL_OK")
</pallas_src>

<mosaic_0001>
module attributes {stable_mosaic.version = 11 : i64} {
  func.func @_encode_kernel(%arg0: i32, %arg1: memref<8x1024xi32, #tpu.memory_space<vmem>>, %arg2: memref<8x1024xi32, #tpu.memory_space<vmem>>) attributes {dimension_semantics = [#tpu.dimension_semantics<parallel>], iteration_bounds = array<i64: 1>, scalar_prefetch = 0 : i64, scratch_operands = 0 : i64, tpu.core_type = #tpu.core_type<tc>, window_params = [{transform_indices = @transform_0, window_bounds = array<i64: 8, 1024>}, {transform_indices = @transform_1, window_bounds = array<i64: 8, 1024>}]} {
    %c0 = arith.constant 0 : index
    %c0_0 = arith.constant 0 : index
    %0 = vector.load %arg1[%c0, %c0_0] : memref<8x1024xi32, #tpu.memory_space<vmem>>, vector<8x1024xi32>
    %c-1_i32 = arith.constant -1 : i32
    %1 = vector.broadcast %c-1_i32 : i32 to vector<8x1024xi32>
    %2 = arith.cmpi sge, %0, %1 : vector<8x1024xi32>
    %c6_i32 = arith.constant 6 : i32
    %3 = vector.broadcast %c6_i32 : i32 to vector<8x1024xi32>
    %4 = arith.cmpi sle, %0, %3 : vector<8x1024xi32>
    %5 = arith.andi %2, %4 : vector<8x1024xi1>
    %c9_i32 = arith.constant 9 : i32
    %6 = vector.broadcast %c9_i32 : i32 to vector<8x1024xi32>
    %7 = arith.cmpi sge, %0, %6 : vector<8x1024xi32>
    %c10_i32 = arith.constant 10 : i32
    %8 = vector.broadcast %c10_i32 : i32 to vector<8x1024xi32>
    %9 = arith.cmpi sle, %0, %8 : vector<8x1024xi32>
    %10 = arith.andi %7, %9 : vector<8x1024xi1>
    %11 = arith.ori %5, %10 : vector<8x1024xi1>
    %c14_i32 = arith.constant 14 : i32
    %12 = vector.broadcast %c14_i32 : i32 to vector<8x1024xi32>
    %13 = arith.cmpi sge, %0, %12 : vector<8x1024xi32>
    %c16_i32 = arith.constant 16 : i32
    %14 = vector.broadcast %c16_i32 : i32 to vector<8x1024xi32>
    %15 = arith.cmpi sle, %0, %14 : vector<8x1024xi32>
    %16 = arith.andi %13, %15 : vector<8x1024xi1>
    %c18_i32 = arith.constant 18 : i32
    %17 = vector.broadcast %c18_i32 : i32 to vector<8x1024xi32>
    %18 = arith.cmpi eq, %0, %17 : vector<8x1024xi32>
    %19 = arith.ori %16, %18 : vector<8x1024xi1>
    %20 = arith.ori %11, %19 : vector<8x1024xi1>
    %c29_i32 = arith.constant 29 : i32
    %21 = vector.broadcast %c29_i32 : i32 to vector<8x1024xi32>
    %22 = arith.cmpi sge, %0, %21 : vector<8x1024xi32>
    %c30_i32 = arith.constant 30 : i32
    %23 = vector.broadcast %c30_i32 : i32 to vector<8x1024xi32>
    %24 = arith.cmpi sle, %0, %23 : vector<8x1024xi32>
    %25 = arith.andi %22, %24 : vector<8x1024xi1>
    %26 = arith.ori %20, %25 : vector<8x1024xi1>
    %c7_i32 = arith.constant 7 : i32
    %27 = vector.broadcast %c7_i32 : i32 to vector<8x1024xi32>
    %28 = arith.cmpi sge, %0, %27 : vector<8x1024xi32>
    %c8_i32 = arith.constant 8 : i32
    %29 = vector.broadcast %c8_i32 : i32 to vector<8x1024xi32>
    %30 = arith.cmpi sle, %0, %29 : vector<8x1024xi32>
    %31 = arith.andi %28, %30 : vector<8x1024xi1>
    %c11_i32 = arith.constant 11 : i32
    %32 = vector.broadcast %c11_i32 : i32 to vector<8x1024xi32>
    %33 = arith.cmpi sge, %0, %32 : vector<8x1024xi32>
    %c13_i32 = arith.constant 13 : i32
    %34 = vector.broadcast %c13_i32 : i32 to vector<8x1024xi32>
    %35 = arith.cmpi sle, %0, %34 : vector<8x1024xi32>
    %36 = arith.andi %33, %35 : vector<8x1024xi1>
    %c17_i32 = arith.constant 17 : i32
    %37 = vector.broadcast %c17_i32 : i32 to vector<8x1024xi32>
    %38 = arith.cmpi eq, %0, %37 : vector<8x1024xi32>
    %c19_i32 = arith.constant 19 : i32
    %39 = vector.broadcast %c19_i32 : i32 to vector<8x1024xi32>
    %40 = arith.cmpi sge, %0, %39 : vector<8x1024xi32>
    %c28_i32 = arith.constant 28 : i32
    %41 = vector.broadcast %c28_i32 : i32 to vector<8x1024xi32>
    %42 = arith.cmpi sle, %0, %41 : vector<8x1024xi32>
    %43 = arith.andi %40, %42 : vector<8x1024xi1>
    %c31_i32 = arith.constant 31 : i32
    %44 = vector.broadcast %c31_i32 : i32 to vector<8x1024xi32>
    %45 = arith.cmpi sge, %0, %44 : vector<8x1024xi32>
    %c33_i32 = arith.constant 33 : i32
    %46 = vector.broadcast %c33_i32 : i32 to vector<8x1024xi32>
    %47 = arith.cmpi sle, %0, %46 : vector<8x1024xi32>
    %48 = arith.andi %45, %47 : vector<8x1024xi1>
    %49 = arith.ori %31, %36 : vector<8x1024xi1>
    %50 = arith.ori %38, %43 : vector<8x1024xi1>
    %51 = arith.ori %49, %50 : vector<8x1024xi1>
    %52 = arith.ori %51, %48 : vector<8x1024xi1>
    %c13_i32_1 = arith.constant 13 : i32
    %c15_i32 = arith.constant 15 : i32
    %53 = vector.broadcast %c13_i32_1 : i32 to vector<8x1024xi32>
    %54 = vector.broadcast %c15_i32 : i32 to vector<8x1024xi32>
    %55 = arith.select %43, %53, %54 : vector<8x1024xi1>, vector<8x1024xi32>
    %c12_i32 = arith.constant 12 : i32
    %56 = vector.broadcast %c12_i32 : i32 to vector<8x1024xi32>
    %57 = arith.select %38, %56, %55 : vector<8x1024xi1>, vector<8x1024xi32>
    %c9_i32_2 = arith.constant 9 : i32
    %58 = vector.broadcast %c9_i32_2 : i32 to vector<8x1024xi32>
    %59 = arith.select %36, %58, %57 : vector<8x1024xi1>, vector<8x1024xi32>
    %c7_i32_3 = arith.constant 7 : i32
    %60 = vector.broadcast %c7_i32_3 : i32 to vector<8x1024xi32>
    %61 = arith.select %31, %60, %59 : vector<8x1024xi1>, vector<8x1024xi32>
    %62 = arith.subi %0, %61 : vector<8x1024xi32>
    %63 = arith.select %52, %62, %0 : vector<8x1024xi1>, vector<8x1024xi32>
    %c19_i32_4 = arith.constant 19 : i32
    %64 = vector.broadcast %c19_i32_4 : i32 to vector<8x1024xi32>
    %65 = arith.select %26, %64, %63 : vector<8x1024xi1>, vector<8x1024xi32>
    %c0_5 = arith.constant 0 : index
    %c0_6 = arith.constant 0 : index
    %66 = vector.load %arg2[%c0_5, %c0_6] : memref<8x1024xi32, #tpu.memory_space<vmem>>, vector<8x1024xi32>
    tpu.vector_store %arg2[%c0_5, %c0_6], %65 {strides = array<i32>} : memref<8x1024xi32, #tpu.memory_space<vmem>>, vector<8x1024xi32>,
    return
  }
  func.func @transform_0(%arg0: i32) -> (i32, i32) {
    %c0_i32 = arith.constant 0 : i32
    %c0_i32_0 = arith.constant 0 : i32
    return %arg0, %c0_i32 : i32, i32
  }
  func.func @transform_1(%arg0: i32) -> (i32, i32) {
    %c0_i32 = arith.constant 0 : i32
    %c0_i32_0 = arith.constant 0 : i32
    return %arg0, %c0_i32 : i32, i32
  }
}

</mosaic_0001>

<bundles_post_ra>
// kernel: tpu_custom_call.1
= control target key start
LH: loop header
LB: loop body
LE: loop exit
PB: predicated region body
PF: predicated region fallthrough
CT: control target
= control target key end

     0   :  { %6 = vsyncpa [#allocation3], 0  ;;  %s688_s0 = inlined_call_operand.hbm [shape: s32[8,1024], index: 0, kind: input, shape index: {}]   ;;  %s689_s1 = inlined_call_operand.hbm [shape: s32[8,1024], index: 1, kind: output, shape index: {}]  }
   0x1   :  { %7 = vsyncpa [#allocation4], 0  ;;  %s427_s6 = smov [#allocation2]  }
   0x2   :  { %s14_s7 = sshll.u32 %s427_s6, 4  ;;  %s15_s7 = int_to_ptr.vmem [resolvable:$true] %s14_s7 }
   0x3   :  { %s391_s8 = scalar_lea.vmem %s15_s7, 1024  ;;  %p396_p1 = scmp.lt.s32.totalorder %s15_s7, %s15_s7 }
   0x4   :  { %p392_p0 = scmp.ne.s32.totalorder %s15_s7, %s391_s8  ;;  %p397_p2 = scmp.lt.s32.totalorder %s391_s8, %s391_s8 }
   0x6   :  { %p398_p3 = por %p397_p2, %p396_p1 }
   0x8   :  { %p399_p4 = pnand %p398_p3, %p392_p0 }
   0xa   :  { %402 = shalt.err (!%p399_p4)
}
   0xb   :  { %17 = dma.hbm_to_vmem [thread:$0]  %s688_s0, 1024, %s15_s7, [#allocation3]  }
   0xc   :  { %423 = dma.done.wait [#allocation3], 1024  }
   0xd   :  { %424 = vsyncadd [#allocation3], 4294966272  ;;  %v21_v0 = vld [vmem:[#allocation2] sm:$0xff]  ;;  %v706_v1 = vmov 0  ;;  %v708_v2 = vmov 0  ;;  %v428_v5 = vmov 15  }
   0xe   :  { %vm29_vm0 = vcmp.ge.s32.totalorder %v21_v0, 4294967295  ;;  %vm37_vm1 = vcmp.le.s32.totalorder %v21_v0, 6  ;;  %vm53_vm2 = vcmp.ge.s32.totalorder %v21_v0, 9  ;;  %vm61_vm3 = vcmp.le.s32.totalorder %v21_v0, 10  ;;  %v22_v8 = vld [vmem:[#allocation2 + $0x8] sm:$0xff]  ;;  %v23_v20 = vld [vmem:[#allocation2 + $0x10] sm:$0xff] }
   0xf   :  { %vm45_vm4 = vmand %vm29_vm0, %vm37_vm1  ;;  %vm85_vm5 = vcmp.ge.s32.totalorder %v21_v0, 14  ;;  %vm93_vm6 = vcmp.le.s32.totalorder %v21_v0, 16  ;;  %vm109_vm8 = vcmp.eq.s32.totalorder %v21_v0, 18  ;;  %vm133_vm11 = vcmp.ge.s32.totalorder %v21_v0, 29  ;;  %v24_v32 = vld [vmem:[#allocation2 + $0x18] sm:$0xff]  ;;  %v25_v44 = vld [vmem:[#allocation2 + $0x20] sm:$0xff] }
  0x10   :  { %vm69_vm7 = vmand %vm53_vm2, %vm61_vm3  ;;  %vm141_vm12 = vcmp.le.s32.totalorder %v21_v0, 30  ;;  %vm165_vm15 = vcmp.ge.s32.totalorder %v21_v0, 7  ;;  %vm173_vm0 = vcmp.le.s32.totalorder %v21_v0, 8  ;;  %vm189_vm2 = vcmp.ge.s32.totalorder %v21_v0, 11  ;;  %v26_v56 = vld [vmem:[#allocation2 + $0x28] sm:$0xff]  ;;  %v27_v4 = vld [vmem:[#allocation2 + $0x30] sm:$0xff] }
  0x11   :  { %vm77_vm9 = vmor %vm45_vm4, %vm69_vm7  ;;  %vm197_vm3 = vcmp.le.s32.totalorder %v21_v0, 13  ;;  %v717_v14 = vmov 0  ;;  %v719_v15 = vmov 0  ;;  %v728_v26 = vmov 0  ;;  %v28_v17 = vld [vmem:[#allocation2 + $0x38] sm:$0xff]  ;;  %s429_s0 = smov [#allocation5]  }
  0x12   :  { %vm101_vm10 = vmand %vm85_vm5, %vm93_vm6  ;;  %vm221_vm5 = vcmp.ge.s32.totalorder %v21_v0, 19  ;;  %vm229_vm6 = vcmp.le.s32.totalorder %v21_v0, 28  ;;  %v730_v27 = vmov 0  ;;  %v739_v38 = vmov 0  ;;  %s371_s11 = sshll.u32 %s429_s0, 4  ;;  %s372_s11 = int_to_ptr.vmem [resolvable:$true] %s371_s11 }
  0x13   :  { %vm117_vm13 = vmor %vm101_vm10, %vm109_vm8  ;;  %vm245_vm8 = vcmp.ge.s32.totalorder %v21_v0, 31  ;;  %v741_v39 = vmov 0  ;;  %v750_v50 = vmov 0  ;;  %v752_v51 = vmov 0  ;;  %s403_s12 = scalar_lea.vmem %s372_s11, 1024  ;;  %p408_p6 = scmp.lt.s32.totalorder %s372_s11, %s372_s11 }
  0x14   :  { %vm443_vm14 = vmor %vm77_vm9, %vm117_vm13  ;;  %vm253_vm9 = vcmp.le.s32.totalorder %v21_v0, 33  ;;  %v761_v62 = vmov 0  ;;  %v763_v63 = vmov 0  ;;  %p404_p5 = scmp.ne.s32.totalorder %s372_s11, %s403_s12  ;;  %p409_p7 = scmp.lt.s32.totalorder %s403_s12, %s403_s12 }
  0x15   :  { %v707_v1 = vsel %vm443_vm14, 4294967295, %v706_v1  ;;  %vm447_vm1 = vmand %vm133_vm11, %vm141_vm12  ;;  %vm213_vm11 = vcmp.eq.s32.totalorder %v21_v0, 17 }
  0x16   :  { %v709_v2 = vsel %vm447_vm1, 4294967295, %v708_v2  ;;  %vm455_vm7 = vmand %vm165_vm15, %vm173_vm0  ;;  %vm30_vm0 = vcmp.ge.s32.totalorder %v22_v8, 4294967295  ;;  %vm38_vm1 = vcmp.le.s32.totalorder %v22_v8, 6  ;;  %p410_p8 = por %p409_p7, %p408_p6 }
  0x17   :  { %vm205_vm10 = vmand %vm189_vm2, %vm197_vm3  ;;  %vm54_vm2 = vcmp.ge.s32.totalorder %v22_v8, 9  ;;  %vm62_vm3 = vcmp.le.s32.totalorder %v22_v8, 10 }
  0x18   :  { %vm237_vm12 = vmand %vm221_vm5, %vm229_vm6  ;;  %p411_p9 = pnand %p410_p8, %p404_p5 }
  0x19   :  { %vm459_vm13 = vmand %vm245_vm8, %vm253_vm9  ;;  %v301_v6 = vsel %vm237_vm12, 13, %v428_v5  ;;  %vm86_vm8 = vcmp.ge.s32.totalorder %v22_v8, 14  ;;  %vm94_vm9 = vcmp.le.s32.totalorder %v22_v8, 16 }
  0x1a   :  { %vm269_vm4 = vmor %vm455_vm7, %vm205_vm10  ;;  %v309_v7 = vsel %vm213_vm11, 12, %v301_v6 }
  0x1b   :  { %vm277_vm15 = vmor %vm213_vm11, %vm237_vm12  ;;  %v317_v9 = vsel %vm205_vm10, 9, %v309_v7  ;;  %vm110_vm12 = vcmp.eq.s32.totalorder %v22_v8, 18  ;;  %vm714_vm10 = vnez %v707_v1 }
  0x1c   :  { %vm285_vm14 = vmor %vm269_vm4, %vm277_vm15  ;;  %v325_v10 = vsel %vm455_vm7, 7, %v317_v9  ;;  %vm715_vm4 = vnez %v709_v2 }
  0x1d   :  { %vm293_vm5 = vmor %vm285_vm14, %vm459_vm13  ;;  %v333_v11 = vsub.s32 %v21_v0, %v325_v10  ;;  %vm134_vm14 = vcmp.ge.s32.totalorder %v22_v8, 29 }
  0x1e   :  { %vm46_vm6 = vmand %vm30_vm0, %vm38_vm1  ;;  %vm142_vm0 = vcmp.le.s32.totalorder %v22_v8, 30 }
  0x1f   :  { %v341_v12 = vsel %vm293_vm5, %v333_v11, %v21_v0  ;;  %vm70_vm11 = vmand %vm54_vm2, %vm62_vm3  ;;  %vm166_vm2 = vcmp.ge.s32.totalorder %v22_v8, 7  ;;  %vm174_vm3 = vcmp.le.s32.totalorder %v22_v8, 8  ;;  %v772_v11 = vmov 0 }
  0x20   :  { %vm716_vm15 = vmor %vm714_vm10, %vm715_vm4  ;;  %vm190_vm10 = vcmp.ge.s32.totalorder %v22_v8, 11 }
  0x21   :  { %v349_v13 = vsel %vm716_vm15, 19, %v341_v12  ;;  %vm78_vm7 = vmor %vm46_vm6, %vm70_vm11  ;;  %vm198_vm15 = vcmp.le.s32.totalorder %v22_v8, 13  ;;  %v774_v12 = vmov 0 }
  0x22   :  { %357 = vst [vmem:[#allocation5] sm:$0xff] %v349_v13  ;;  %vm102_vm13 = vmand %vm86_vm8, %vm94_vm9  ;;  %vm222_vm8 = vcmp.ge.s32.totalorder %v22_v8, 19  ;;  %vm230_vm9 = vcmp.le.s32.totalorder %v22_v8, 28 }
  0x23   :  { %vm118_vm1 = vmor %vm102_vm13, %vm110_vm12  ;;  %vm246_vm12 = vcmp.ge.s32.totalorder %v22_v8, 31 }
  0x24   :  { %vm475_vm5 = vmor %vm78_vm7, %vm118_vm1  ;;  %vm254_vm7 = vcmp.le.s32.totalorder %v22_v8, 33 }
  0x25   :  { %v718_v14 = vsel %vm475_vm5, 4294967295, %v717_v14  ;;  %vm479_vm4 = vmand %vm134_vm14, %vm142_vm0  ;;  %vm214_vm14 = vcmp.eq.s32.totalorder %v22_v8, 17 }
  0x26   :  { %v720_v15 = vsel %vm479_vm4, 4294967295, %v719_v15  ;;  %vm487_vm11 = vmand %vm166_vm2, %vm174_vm3  ;;  %vm31_vm3 = vcmp.ge.s32.totalorder %v23_v20, 4294967295  ;;  %vm39_vm4 = vcmp.le.s32.totalorder %v23_v20, 6 }
  0x27   :  { %vm206_vm13 = vmand %vm190_vm10, %vm198_vm15  ;;  %vm55_vm10 = vcmp.ge.s32.totalorder %v23_v20, 9  ;;  %vm63_vm15 = vcmp.le.s32.totalorder %v23_v20, 10 }
  0x28   :  { %vm238_vm0 = vmand %vm222_vm8, %vm230_vm9 }
  0x29   :  { %vm491_vm1 = vmand %vm246_vm12, %vm254_vm7  ;;  %v302_v18 = vsel %vm238_vm0, 13, %v428_v5  ;;  %vm87_vm12 = vcmp.ge.s32.totalorder %v23_v20, 14  ;;  %vm95_vm7 = vcmp.le.s32.totalorder %v23_v20, 16 }
  0x2a   :  { %vm270_vm6 = vmor %vm487_vm11, %vm206_vm13  ;;  %v310_v19 = vsel %vm214_vm14, 12, %v302_v18 }
  0x2b   :  { %vm278_vm2 = vmor %vm214_vm14, %vm238_vm0  ;;  %v318_v21 = vsel %vm206_vm13, 9, %v310_v19  ;;  %vm111_vm14 = vcmp.eq.s32.totalorder %v23_v20, 18  ;;  %vm725_vm13 = vnez %v718_v14 }
  0x2c   :  { %vm286_vm5 = vmor %vm270_vm6, %vm278_vm2  ;;  %v326_v22 = vsel %vm487_vm11, 7, %v318_v21  ;;  %vm726_vm2 = vnez %v720_v15 }
  0x2d   :  { %vm294_vm8 = vmor %vm286_vm5, %vm491_vm1  ;;  %v334_v23 = vsub.s32 %v22_v8, %v326_v22  ;;  %vm135_vm5 = vcmp.ge.s32.totalorder %v23_v20, 29 }
  0x2e   :  { %vm47_vm9 = vmand %vm31_vm3, %vm39_vm4  ;;  %vm143_vm3 = vcmp.le.s32.totalorder %v23_v20, 30 }
  0x2f   :  { %v342_v24 = vsel %vm294_vm8, %v334_v23, %v22_v8  ;;  %vm71_vm0 = vmand %vm55_vm10, %vm63_vm15  ;;  %vm167_vm10 = vcmp.ge.s32.totalorder %v23_v20, 7  ;;  %vm175_vm15 = vcmp.le.s32.totalorder %v23_v20, 8  ;;  %v783_v23 = vmov 0 }
  0x30   :  { %vm727_vm6 = vmor %vm725_vm13, %vm726_vm2  ;;  %vm191_vm13 = vcmp.ge.s32.totalorder %v23_v20, 11 }
  0x31   :  { %v350_v25 = vsel %vm727_vm6, 19, %v342_v24  ;;  %vm79_vm11 = vmor %vm47_vm9, %vm71_vm0  ;;  %vm199_vm6 = vcmp.le.s32.totalorder %v23_v20, 13  ;;  %v785_v24 = vmov 0 }
  0x32   :  { %358 = vst [vmem:[#allocation5 + $0x8] sm:$0xff] %v350_v25  ;;  %vm103_vm1 = vmand %vm87_vm12, %vm95_vm7  ;;  %vm223_vm12 = vcmp.ge.s32.totalorder %v23_v20, 19  ;;  %vm231_vm7 = vcmp.le.s32.totalorder %v23_v20, 28 }
  0x33   :  { %vm119_vm4 = vmor %vm103_vm1, %vm111_vm14  ;;  %vm247_vm14 = vcmp.ge.s32.totalorder %v23_v20, 31 }
  0x34   :  { %vm507_vm8 = vmor %vm79_vm11, %vm119_vm4  ;;  %vm255_vm11 = vcmp.le.s32.totalorder %v23_v20, 33 }
  0x35   :  { %v729_v26 = vsel %vm507_vm8, 4294967295, %v728_v26  ;;  %vm511_vm2 = vmand %vm135_vm5, %vm143_vm3  ;;  %vm215_vm5 = vcmp.eq.s32.totalorder %v23_v20, 17 }
  0x36   :  { %v731_v27 = vsel %vm511_vm2, 4294967295, %v730_v27  ;;  %vm519_vm0 = vmand %vm167_vm10, %vm175_vm15  ;;  %vm32_vm15 = vcmp.ge.s32.totalorder %v24_v32, 4294967295  ;;  %vm40_vm2 = vcmp.le.s32.totalorder %v24_v32, 6 }
  0x37   :  { %vm207_vm1 = vmand %vm191_vm13, %vm199_vm6  ;;  %vm56_vm13 = vcmp.ge.s32.totalorder %v24_v32, 9  ;;  %vm64_vm6 = vcmp.le.s32.totalorder %v24_v32, 10 }
  0x38   :  { %vm239_vm3 = vmand %vm223_vm12, %vm231_vm7 }
  0x39   :  { %vm523_vm4 = vmand %vm247_vm14, %vm255_vm11  ;;  %v303_v30 = vsel %vm239_vm3, 13, %v428_v5  ;;  %vm88_vm14 = vcmp.ge.s32.totalorder %v24_v32, 14  ;;  %vm96_vm11 = vcmp.le.s32.totalorder %v24_v32, 16 }
  0x3a   :  { %vm271_vm9 = vmor %vm519_vm0, %vm207_vm1  ;;  %v311_v31 = vsel %vm215_vm5, 12, %v303_v30 }
  0x3b   :  { %vm279_vm10 = vmor %vm215_vm5, %vm239_vm3  ;;  %v319_v33 = vsel %vm207_vm1, 9, %v311_v31  ;;  %vm112_vm5 = vcmp.eq.s32.totalorder %v24_v32, 18  ;;  %vm736_vm1 = vnez %v729_v26 }
  0x3c   :  { %vm287_vm8 = vmor %vm271_vm9, %vm279_vm10  ;;  %v327_v34 = vsel %vm519_vm0, 7, %v319_v33  ;;  %vm737_vm9 = vnez %v731_v27 }
  0x3d   :  { %vm295_vm12 = vmor %vm287_vm8, %vm523_vm4  ;;  %v335_v35 = vsub.s32 %v23_v20, %v327_v34  ;;  %vm136_vm8 = vcmp.ge.s32.totalorder %v24_v32, 29 }
  0x3e   :  { %vm48_vm7 = vmand %vm32_vm15, %vm40_vm2  ;;  %vm144_vm2 = vcmp.le.s32.totalorder %v24_v32, 30 }
  0x3f   :  { %v343_v36 = vsel %vm295_vm12, %v335_v35, %v23_v20  ;;  %vm72_vm3 = vmand %vm56_vm13, %vm64_vm6  ;;  %vm168_vm6 = vcmp.ge.s32.totalorder %v24_v32, 7  ;;  %vm176_vm13 = vcmp.le.s32.totalorder %v24_v32, 8 }
  0x40   :  { %vm738_vm10 = vmor %vm736_vm1, %vm737_vm9  ;;  %vm192_vm9 = vcmp.ge.s32.totalorder %v24_v32, 11 }
  0x41   :  { %v351_v37 = vsel %vm738_vm10, 19, %v343_v36  ;;  %vm80_vm0 = vmor %vm48_vm7, %vm72_vm3  ;;  %vm200_vm10 = vcmp.le.s32.totalorder %v24_v32, 13 }
  0x42   :  { %359 = vst [vmem:[#allocation5 + $0x10] sm:$0xff] %v351_v37  ;;  %vm104_vm4 = vmand %vm88_vm14, %vm96_vm11  ;;  %vm224_vm14 = vcmp.ge.s32.totalorder %v24_v32, 19  ;;  %vm232_vm11 = vcmp.le.s32.totalorder %v24_v32, 28 }
  0x43   :  { %vm120_vm15 = vmor %vm104_vm4, %vm112_vm5  ;;  %vm248_vm5 = vcmp.ge.s32.totalorder %v24_v32, 31 }
  0x44   :  { %vm539_vm12 = vmor %vm80_vm0, %vm120_vm15  ;;  %vm256_vm0 = vcmp.le.s32.totalorder %v24_v32, 33 }
  0x45   :  { %v740_v38 = vsel %vm539_vm12, 4294967295, %v739_v38  ;;  %vm543_vm1 = vmand %vm136_vm8, %vm144_vm2  ;;  %vm216_vm8 = vcmp.eq.s32.totalorder %v24_v32, 17 }
  0x46   :  { %v742_v39 = vsel %vm543_vm1, 4294967295, %v741_v39  ;;  %vm551_vm3 = vmand %vm168_vm6, %vm176_vm13  ;;  %vm33_vm13 = vcmp.ge.s32.totalorder %v25_v44, 4294967295  ;;  %vm41_vm1 = vcmp.le.s32.totalorder %v25_v44, 6 }
  0x47   :  { %vm208_vm4 = vmand %vm192_vm9, %vm200_vm10  ;;  %vm57_vm9 = vcmp.ge.s32.totalorder %v25_v44, 9  ;;  %vm65_vm10 = vcmp.le.s32.totalorder %v25_v44, 10 }
  0x48   :  { %vm240_vm2 = vmand %vm224_vm14, %vm232_vm11 }
  0x49   :  { %vm555_vm15 = vmand %vm248_vm5, %vm256_vm0  ;;  %v304_v42 = vsel %vm240_vm2, 13, %v428_v5  ;;  %vm89_vm5 = vcmp.ge.s32.totalorder %v25_v44, 14  ;;  %vm97_vm0 = vcmp.le.s32.totalorder %v25_v44, 16 }
  0x4a   :  { %vm272_vm7 = vmor %vm551_vm3, %vm208_vm4  ;;  %v312_v43 = vsel %vm216_vm8, 12, %v304_v42 }
  0x4b   :  { %vm280_vm6 = vmor %vm216_vm8, %vm240_vm2  ;;  %v320_v45 = vsel %vm208_vm4, 9, %v312_v43  ;;  %vm113_vm8 = vcmp.eq.s32.totalorder %v25_v44, 18  ;;  %vm747_vm4 = vnez %v740_v38 }
  0x4c   :  { %vm288_vm12 = vmor %vm272_vm7, %vm280_vm6  ;;  %v328_v46 = vsel %vm551_vm3, 7, %v320_v45  ;;  %vm748_vm6 = vnez %v742_v39 }
  0x4d   :  { %vm296_vm14 = vmor %vm288_vm12, %vm555_vm15  ;;  %v336_v47 = vsub.s32 %v24_v32, %v328_v46  ;;  %vm137_vm15 = vcmp.ge.s32.totalorder %v25_v44, 29 }
  0x4e   :  { %vm49_vm11 = vmand %vm33_vm13, %vm41_vm1  ;;  %vm145_vm1 = vcmp.le.s32.totalorder %v25_v44, 30 }
  0x4f   :  { %v344_v48 = vsel %vm296_vm14, %v336_v47, %v24_v32  ;;  %vm73_vm2 = vmand %vm57_vm9, %vm65_vm10  ;;  %vm169_vm9 = vcmp.ge.s32.totalorder %v25_v44, 7  ;;  %vm177_vm10 = vcmp.le.s32.totalorder %v25_v44, 8 }
  0x50   :  { %vm749_vm7 = vmor %vm747_vm4, %vm748_vm6  ;;  %vm193_vm6 = vcmp.ge.s32.totalorder %v25_v44, 11 }
  0x51   :  { %v352_v49 = vsel %vm749_vm7, 19, %v344_v48  ;;  %vm81_vm3 = vmor %vm49_vm11, %vm73_vm2  ;;  %vm201_vm7 = vcmp.le.s32.totalorder %v25_v44, 13 }
  0x52   :  { %360 = vst [vmem:[#allocation5 + $0x18] sm:$0xff] %v352_v49  ;;  %vm105_vm12 = vmand %vm89_vm5, %vm97_vm0  ;;  %vm225_vm5 = vcmp.ge.s32.totalorder %v25_v44, 19  ;;  %vm233_vm0 = vcmp.le.s32.totalorder %v25_v44, 28 }
  0x53   :  { %vm121_vm13 = vmor %vm105_vm12, %vm113_vm8  ;;  %vm249_vm8 = vcmp.ge.s32.totalorder %v25_v44, 31 }
  0x54   :  { %vm571_vm14 = vmor %vm81_vm3, %vm121_vm13  ;;  %vm257_vm3 = vcmp.le.s32.totalorder %v25_v44, 33 }
  0x55   :  { %v751_v50 = vsel %vm571_vm14, 4294967295, %v750_v50  ;;  %vm575_vm4 = vmand %vm137_vm15, %vm145_vm1  ;;  %vm217_vm15 = vcmp.eq.s32.totalorder %v25_v44, 17 }
  0x56   :  { %v753_v51 = vsel %vm575_vm4, 4294967295, %v752_v51  ;;  %vm583_vm2 = vmand %vm169_vm9, %vm177_vm10  ;;  %vm34_vm10 = vcmp.ge.s32.totalorder %v26_v56, 4294967295  ;;  %vm42_vm4 = vcmp.le.s32.totalorder %v26_v56, 6 }
  0x57   :  { %vm209_vm12 = vmand %vm193_vm6, %vm201_vm7  ;;  %vm58_vm6 = vcmp.ge.s32.totalorder %v26_v56, 9  ;;  %vm66_vm7 = vcmp.le.s32.totalorder %v26_v56, 10 }
  0x58   :  { %vm241_vm1 = vmand %vm225_vm5, %vm233_vm0 }
  0x59   :  { %vm587_vm13 = vmand %vm249_vm8, %vm257_vm3  ;;  %v305_v54 = vsel %vm241_vm1, 13, %v428_v5  ;;  %vm90_vm8 = vcmp.ge.s32.totalorder %v26_v56, 14  ;;  %vm98_vm3 = vcmp.le.s32.totalorder %v26_v56, 16 }
  0x5a   :  { %vm273_vm11 = vmor %vm583_vm2, %vm209_vm12  ;;  %v313_v55 = vsel %vm217_vm15, 12, %v305_v54 }
  0x5b   :  { %vm281_vm9 = vmor %vm217_vm15, %vm241_vm1  ;;  %v321_v57 = vsel %vm209_vm12, 9, %v313_v55  ;;  %vm114_vm15 = vcmp.eq.s32.totalorder %v26_v56, 18  ;;  %vm758_vm12 = vnez %v751_v50 }
  0x5c   :  { %vm289_vm14 = vmor %vm273_vm11, %vm281_vm9  ;;  %v329_v58 = vsel %vm583_vm2, 7, %v321_v57  ;;  %vm759_vm9 = vnez %v753_v51 }
  0x5d   :  { %vm297_vm5 = vmor %vm289_vm14, %vm587_vm13  ;;  %v337_v59 = vsub.s32 %v25_v44, %v329_v58  ;;  %vm138_vm14 = vcmp.ge.s32.totalorder %v26_v56, 29 }
  0x5e   :  { %vm50_vm0 = vmand %vm34_vm10, %vm42_vm4  ;;  %vm146_vm4 = vcmp.le.s32.totalorder %v26_v56, 30 }
  0x5f   :  { %v345_v60 = vsel %vm297_vm5, %v337_v59, %v25_v44  ;;  %vm74_vm1 = vmand %vm58_vm6, %vm66_vm7  ;;  %vm170_vm6 = vcmp.ge.s32.totalorder %v26_v56, 7  ;;  %vm178_vm7 = vcmp.le.s32.totalorder %v26_v56, 8 }
  0x60   :  { %vm760_vm11 = vmor %vm758_vm12, %vm759_vm9  ;;  %vm194_vm12 = vcmp.ge.s32.totalorder %v26_v56, 11 }
  0x61   :  { %v353_v61 = vsel %vm760_vm11, 19, %v345_v60  ;;  %vm82_vm2 = vmor %vm50_vm0, %vm74_vm1  ;;  %vm202_vm11 = vcmp.le.s32.totalorder %v26_v56, 13 }
  0x62   :  { %361 = vst [vmem:[#allocation5 + $0x20] sm:$0xff] %v353_v61  ;;  %vm106_vm13 = vmand %vm90_vm8, %vm98_vm3  ;;  %vm226_vm8 = vcmp.ge.s32.totalorder %v26_v56, 19  ;;  %vm234_vm3 = vcmp.le.s32.totalorder %v26_v56, 28 }
  0x63   :  { %vm122_vm10 = vmor %vm106_vm13, %vm114_vm15  ;;  %vm250_vm15 = vcmp.ge.s32.totalorder %v26_v56, 31 }
  0x64   :  { %vm603_vm5 = vmor %vm82_vm2, %vm122_vm10  ;;  %vm258_vm2 = vcmp.le.s32.totalorder %v26_v56, 33 }
  0x65   :  { %v762_v62 = vsel %vm603_vm5, 4294967295, %v761_v62  ;;  %vm607_vm9 = vmand %vm138_vm14, %vm146_vm4  ;;  %vm218_vm14 = vcmp.eq.s32.totalorder %v26_v56, 17 }
  0x66   :  { %v764_v63 = vsel %vm607_vm9, 4294967295, %v763_v63  ;;  %vm615_vm1 = vmand %vm170_vm6, %vm178_vm7  ;;  %vm35_vm7 = vcmp.ge.s32.totalorder %v27_v4, 4294967295  ;;  %vm43_vm9 = vcmp.le.s32.totalorder %v27_v4, 6 }
  0x67   :  { %vm210_vm13 = vmand %vm194_vm12, %vm202_vm11  ;;  %vm59_vm12 = vcmp.ge.s32.totalorder %v27_v4, 9  ;;  %vm67_vm11 = vcmp.le.s32.totalorder %v27_v4, 10 }
  0x68   :  { %vm242_vm4 = vmand %vm226_vm8, %vm234_vm3 }
  0x69   :  { %vm619_vm10 = vmand %vm250_vm15, %vm258_vm2  ;;  %v306_v2 = vsel %vm242_vm4, 13, %v428_v5  ;;  %vm91_vm15 = vcmp.ge.s32.totalorder %v27_v4, 14  ;;  %vm99_vm2 = vcmp.le.s32.totalorder %v27_v4, 16 }
  0x6a   :  { %vm274_vm0 = vmor %vm615_vm1, %vm210_vm13  ;;  %v314_v3 = vsel %vm218_vm14, 12, %v306_v2 }
  0x6b   :  { %vm282_vm6 = vmor %vm218_vm14, %vm242_vm4  ;;  %v322_v6 = vsel %vm210_vm13, 9, %v314_v3  ;;  %vm115_vm14 = vcmp.eq.s32.totalorder %v27_v4, 18  ;;  %vm769_vm13 = vnez %v762_v62 }
  0x6c   :  { %vm290_vm5 = vmor %vm274_vm0, %vm282_vm6  ;;  %v330_v7 = vsel %vm615_vm1, 7, %v322_v6  ;;  %vm770_vm0 = vnez %v764_v63 }
  0x6d   :  { %vm298_vm8 = vmor %vm290_vm5, %vm619_vm10  ;;  %v338_v8 = vsub.s32 %v26_v56, %v330_v7  ;;  %vm139_vm10 = vcmp.ge.s32.totalorder %v27_v4, 29 }
  0x6e   :  { %vm51_vm3 = vmand %vm35_vm7, %vm43_vm9  ;;  %vm147_vm7 = vcmp.le.s32.totalorder %v27_v4, 30 }
  0x6f   :  { %v346_v9 = vsel %vm298_vm8, %v338_v8, %v26_v56  ;;  %vm75_vm4 = vmand %vm59_vm12, %vm67_vm11  ;;  %vm171_vm11 = vcmp.ge.s32.totalorder %v27_v4, 7  ;;  %vm179_vm12 = vcmp.le.s32.totalorder %v27_v4, 8 }
  0x70   :  { %vm771_vm6 = vmor %vm769_vm13, %vm770_vm0  ;;  %vm195_vm13 = vcmp.ge.s32.totalorder %v27_v4, 11 }
  0x71   :  { %v354_v10 = vsel %vm771_vm6, 19, %v346_v9  ;;  %vm83_vm1 = vmor %vm51_vm3, %vm75_vm4  ;;  %vm203_vm6 = vcmp.le.s32.totalorder %v27_v4, 13 }
  0x72   :  { %362 = vst [vmem:[#allocation5 + $0x28] sm:$0xff] %v354_v10  ;;  %vm107_vm5 = vmand %vm91_vm15, %vm99_vm2  ;;  %vm227_vm15 = vcmp.ge.s32.totalorder %v27_v4, 19  ;;  %vm235_vm2 = vcmp.le.s32.totalorder %v27_v4, 28 }
  0x73   :  { %vm123_vm9 = vmor %vm107_vm5, %vm115_vm14  ;;  %vm251_vm14 = vcmp.ge.s32.totalorder %v27_v4, 31 }
  0x74   :  { %vm635_vm8 = vmor %vm83_vm1, %vm123_vm9  ;;  %vm259_vm1 = vcmp.le.s32.totalorder %v27_v4, 33 }
  0x75   :  { %v773_v11 = vsel %vm635_vm8, 4294967295, %v772_v11  ;;  %vm639_vm0 = vmand %vm139_vm10, %vm147_vm7  ;;  %vm219_vm10 = vcmp.eq.s32.totalorder %v27_v4, 17 }
  0x76   :  { %v775_v12 = vsel %vm639_vm0, 4294967295, %v774_v12  ;;  %vm647_vm4 = vmand %vm171_vm11, %vm179_vm12  ;;  %vm36_vm12 = vcmp.ge.s32.totalorder %v28_v17, 4294967295  ;;  %vm44_vm0 = vcmp.le.s32.totalorder %v28_v17, 6 }
  0x77   :  { %vm211_vm5 = vmand %vm195_vm13, %vm203_vm6  ;;  %vm60_vm13 = vcmp.ge.s32.totalorder %v28_v17, 9  ;;  %vm68_vm6 = vcmp.le.s32.totalorder %v28_v17, 10 }
  0x78   :  { %vm243_vm7 = vmand %vm227_vm15, %vm235_vm2 }
  0x79   :  { %vm651_vm9 = vmand %vm251_vm14, %vm259_vm1  ;;  %v307_v15 = vsel %vm243_vm7, 13, %v428_v5  ;;  %vm92_vm14 = vcmp.ge.s32.totalorder %v28_v17, 14  ;;  %vm100_vm1 = vcmp.le.s32.totalorder %v28_v17, 16 }
  0x7a   :  { %vm275_vm3 = vmor %vm647_vm4, %vm211_vm5  ;;  %v315_v16 = vsel %vm219_vm10, 12, %v307_v15 }
  0x7b   :  { %vm283_vm11 = vmor %vm219_vm10, %vm243_vm7  ;;  %v323_v18 = vsel %vm211_vm5, 9, %v315_v16  ;;  %vm116_vm10 = vcmp.eq.s32.totalorder %v28_v17, 18  ;;  %vm780_vm5 = vnez %v773_v11 }
  0x7c   :  { %vm291_vm8 = vmor %vm275_vm3, %vm283_vm11  ;;  %v331_v19 = vsel %vm647_vm4, 7, %v323_v18  ;;  %vm781_vm3 = vnez %v775_v12 }
  0x7d   :  { %vm299_vm15 = vmor %vm291_vm8, %vm651_vm9  ;;  %v339_v20 = vsub.s32 %v27_v4, %v331_v19  ;;  %vm140_vm9 = vcmp.ge.s32.totalorder %v28_v17, 29 }
  0x7e   :  { %vm52_vm2 = vmand %vm36_vm12, %vm44_vm0  ;;  %vm148_vm0 = vcmp.le.s32.totalorder %v28_v17, 30 }
  0x7f   :  { %v347_v21 = vsel %vm299_vm15, %v339_v20, %v27_v4  ;;  %vm76_vm7 = vmand %vm60_vm13, %vm68_vm6  ;;  %vm172_vm6 = vcmp.ge.s32.totalorder %v28_v17, 7  ;;  %vm180_vm13 = vcmp.le.s32.totalorder %v28_v17, 8 }
  0x80   :  { %vm782_vm11 = vmor %vm780_vm5, %vm781_vm3  ;;  %vm196_vm5 = vcmp.ge.s32.totalorder %v28_v17, 11 }
  0x81   :  { %v355_v22 = vsel %vm782_vm11, 19, %v347_v21  ;;  %vm84_vm4 = vmor %vm52_vm2, %vm76_vm7  ;;  %vm204_vm11 = vcmp.le.s32.totalorder %v28_v17, 13 }
  0x82   :  { %363 = vst [vmem:[#allocation5 + $0x30] sm:$0xff] %v355_v22  ;;  %vm108_vm8 = vmand %vm92_vm14, %vm100_vm1  ;;  %vm228_vm14 = vcmp.ge.s32.totalorder %v28_v17, 19  ;;  %vm236_vm1 = vcmp.le.s32.totalorder %v28_v17, 28 }
  0x83   :  { %vm124_vm12 = vmor %vm108_vm8, %vm116_vm10  ;;  %vm252_vm10 = vcmp.ge.s32.totalorder %v28_v17, 31 }
  0x84   :  { %vm667_vm15 = vmor %vm84_vm4, %vm124_vm12  ;;  %vm260_vm4 = vcmp.le.s32.totalorder %v28_v17, 33  ;;  %vm220_vm12 = vcmp.eq.s32.totalorder %v28_v17, 17 }
  0x85   :  { %v784_v23 = vsel %vm667_vm15, 4294967295, %v783_v23  ;;  %vm671_vm3 = vmand %vm140_vm9, %vm148_vm0 }
  0x86   :  { %v786_v24 = vsel %vm671_vm3, 4294967295, %v785_v24  ;;  %vm188_vm7 = vmand %vm172_vm6, %vm180_vm13  ;;  %vm787_vm13 = vnez %v784_v23 }
  0x87   :  { %vm212_vm8 = vmand %vm196_vm5, %vm204_vm11  ;;  %vm788_vm5 = vnez %v786_v24 }
  0x88   :  { %vm244_vm0 = vmand %vm228_vm14, %vm236_vm1 }
  0x89   :  { %vm268_vm9 = vmand %vm252_vm10, %vm260_vm4  ;;  %v308_v25 = vsel %vm244_vm0, 13, %v428_v5 }
  0x8a   :  { %vm276_vm2 = vmor %vm188_vm7, %vm212_vm8  ;;  %v316_v26 = vsel %vm220_vm12, 12, %v308_v25 }
  0x8b   :  { %vm284_vm3 = vmor %vm220_vm12, %vm244_vm0  ;;  %v324_v27 = vsel %vm212_vm8, 9, %v316_v26 }
  0x8c   :  { %vm292_vm15 = vmor %vm276_vm2, %vm284_vm3  ;;  %v332_v28 = vsel %vm188_vm7, 7, %v324_v27 }
  0x8d   :  { %vm300_vm6 = vmor %vm292_vm15, %vm268_vm9  ;;  %v340_v29 = vsub.s32 %v28_v17, %v332_v28 }
  0x8e   :  { %vm789_vm11 = vmor %vm787_vm13, %vm788_vm5 }
  0x8f   :  { %v348_v30 = vsel %vm300_vm6, %v340_v29, %v28_v17 }
  0x90   :  { %v356_v31 = vsel %vm789_vm11, 19, %v348_v30 }
  0x91   :  { %364 = vst [vmem:[#allocation5 + $0x38] sm:$0xff] %v356_v31 }
  0x92   :  { %414 = shalt.err (!%p411_p9)
}
  0x93   :  { %374 = dma.vmem_to_hbm [thread:$0]  %s372_s11, 1024, %s689_s1, [#allocation4]  }
  0x94   :  { %425 = dma.done.wait [#allocation4], 1024  }
  0x95   :  { %426 = vsyncadd [#allocation4], 4294966272 }
  0x96   :  { %378 = vsyncpa [#allocation3], 1 }
  0x97   :  { %379 = vsyncpa [#allocation4], 1 }

</bundles_post_ra>
